<compile_context>
chip_gen: v7x
topology: tpu7x:2x2x1
jax: 0.10.0
libtpu: 0.0.40
codegen_flags: <defaults>
</compile_context>

<pallas_src>
import functools
import math

import jax
import jax.numpy as jnp
import numpy as np
from jax.experimental import pallas as pl
from jax.experimental.pallas import tpu as pltpu


def _round_up(x: int, m: int) -> int:
    return ((x + m - 1) // m) * m


def _pick_batch_block(batch: int, seq_len: int) -> int:
    """Rows-per-matmul vs. grid-parallelism trade-off.

    Fold batches into each grid step until the matmul has ~>=256 rows (fills a
    v6e/v7x MXU pass; per-grid-step overhead ~0.35us), but keep >=2 grid steps
    whenever batch >= 2 so a v7x chip (2 TensorCores) has parallel work.
    Only divisors of `batch` are considered so every block is full.
    """
    target = max(1, 256 // max(seq_len, 1))
    divisors = [d for d in range(1, batch + 1) if batch % d == 0]
    b_blk = max([d for d in divisors if d <= target] or [1])
    if batch >= 2 and batch // b_blk < 2:
        b_blk = max(d for d in divisors if batch // d >= 2)
    return b_blk


def _conv_bn_relu(h, w_ref, b_ref, first_row, last_row):
    """Fused Conv1d(k=3, pad=1) + folded-BN bias + ReLU on stacked rows.

    h:         (R, C) f32 activations, R = B_blk * L rows (batch-major).
    w_ref:     (K_pad, Cout) bf16 im2col weight, tap-major [l-1, l, l+1], BN
               scale folded in, K zero-padded to a multiple of 16.
    b_ref:     (1, Cout) f32 folded bias.
    first_row: (R, 1) bool, True where the row is position 0 of its sequence.
    last_row:  (R, 1) bool, True where the row is position L-1 of its sequence.
    """
    rows, c = h.shape
    k_pad = w_ref.shape[0]
    # +/-1 taps via XLU sublane rotation; the boundary mask zeroes both the
    # per-sequence edges and the wrap-around row introduced by the rotation.
    h_prev = jnp.where(first_row, 0.0, pltpu.roll(h, shift=1, axis=0))
    h_next = jnp.where(last_row, 0.0, pltpu.roll(h, shift=rows - 1, axis=0))
    taps = [h_prev, h, h_next]
    if k_pad > 3 * c:  # zero columns matching the K-padded weight rows
        taps.append(jnp.zeros((rows, k_pad - 3 * c), h.dtype))
    xi = jnp.concatenate(taps, axis=-1)                        # (R, K_pad) im2col
    acc = jnp.dot(xi.astype(jnp.bfloat16), w_ref[...],
                  preferred_element_type=jnp.float32)          # single MXU matmul
    return jnp.maximum(acc + b_ref[...], 0.0)                  # bias + ReLU, f32


def cnn_kernel(x_ref, w1_ref, b1_ref, w2_ref, b2_ref, w3_ref, b3_ref, o_ref):
    """Three fused conv+BN+ReLU layers; intermediates stay on-chip.

    x_ref: (B_blk, L, Cin); o_ref: (B_blk, L, Cout) or lane-dense
           (B_blk, L*Cout/128, 128).
    """
    b_blk, seq_len, cin = x_ref.shape
    rows = b_blk * seq_len
    x = x_ref[...].reshape(rows, cin).astype(jnp.float32)      # fold batch into M
    # Per-sequence boundary masks (row index modulo L), shared by all 3 layers.
    row_in_seq = jax.lax.broadcasted_iota(jnp.int32, (rows, 1), 0) % seq_len
    first_row = row_in_seq == 0
    last_row = row_in_seq == seq_len - 1

    h1 = _conv_bn_relu(x, w1_ref, b1_ref, first_row, last_row)    # stays on-chip
    h2 = _conv_bn_relu(h1, w2_ref, b2_ref, first_row, last_row)   # stays on-chip
    h3 = _conv_bn_relu(h2, w3_ref, b3_ref, first_row, last_row)
    # Single store; o_ref's block shape decides plain vs. lane-dense layout.
    o_ref[...] = h3.reshape(o_ref.shape).astype(o_ref.dtype)


def cnn_feature_extractor(x, params, *, out_dtype=None, lane_dense=None):
    """Equivalent of CNNFeatureExtractor.forward: (B, L, input_dim) -> (B, L, hidden)."""
    (w1, b1), (w2, b2), (w3, b3) = params
    B, L, Cin = x.shape
    Cout = w3.shape[1]
    out_dtype = x.dtype if out_dtype is None else out_dtype
    # TODO(synk): pass out_dtype=jnp.bfloat16 when the downstream transformer
    #             consumes bf16 -- halves the only remaining HBM write.

    b_blk = _pick_batch_block(B, L)
    n_groups = B // b_blk

    # Lane-dense output layout (last dim 128 instead of Cout) when possible.
    if lane_dense is None:
        lane_dense = (L * Cout) % 128 == 0
    if lane_dense:
        g_rows = (L * Cout) // 128
        out_shape = jax.ShapeDtypeStruct((B, g_rows, 128), out_dtype)
        out_spec = pl.BlockSpec((b_blk, g_rows, 128), lambda g: (g, 0, 0))
    else:
        out_shape = jax.ShapeDtypeStruct((B, L, Cout), out_dtype)
        out_spec = pl.BlockSpec((b_blk, L, Cout), lambda g: (g, 0, 0))

    out = pl.pallas_call(
        cnn_kernel,
        out_shape=out_shape,
        grid=(n_groups,),
        in_specs=[
            pl.BlockSpec((b_blk, L, Cin), lambda g: (g, 0, 0)),
            # Weights / biases are tiny: full-array blocks, resident every step.
            pl.BlockSpec(w1.shape, lambda g: (0, 0)),
            pl.BlockSpec(b1.shape, lambda g: (0, 0)),
            pl.BlockSpec(w2.shape, lambda g: (0, 0)),
            pl.BlockSpec(b2.shape, lambda g: (0, 0)),
            pl.BlockSpec(w3.shape, lambda g: (0, 0)),
            pl.BlockSpec(b3.shape, lambda g: (0, 0)),
        ],
        out_specs=out_spec,
        compiler_params=pltpu.CompilerParams(
            dimension_semantics=("parallel",),
            # Explicit scoped-VMEM budget; safe on v7x (64 MiB physical).
            vmem_limit_bytes=32 * 1024 * 1024,
        ),
    )(x, w1, b1, w2, b2, w3, b3)

    if lane_dense:
        out = out.reshape(B, L, Cout)
    return out


def init_layer(key, c_in, c_out):
    """Deterministic PyTorch-like init for Conv1d + BatchNorm1d (eval mode).

    Returns (w_im2col_bf16, bias_f32):
      w_im2col: (K_pad, c_out) bf16 -- BN scale folded in, tap-major
                [l-1, l, l+1] with channel minor, K = 3*c_in zero-padded to a
                multiple of 16 (bf16 sublane packing).
      bias:     (1, c_out) f32 = beta + s*(conv_bias - running_mean)
    """
    kw, kb, kg, kbeta = jax.random.split(key, 4)
    fan_in = c_in * 3
    bound = 1.0 / math.sqrt(fan_in)
    # Conv1d weight in PyTorch layout (C_out, C_in, 3); tap k=0 hits x[l-1].
    w = jax.random.uniform(kw, (c_out, c_in, 3), jnp.float32, -bound, bound)
    conv_bias = jax.random.uniform(kb, (c_out,), jnp.float32, -bound, bound)
    # BatchNorm params, inference mode with fresh running stats (mean=0, var=1).
    gamma = 1.0 + 0.1 * jax.random.normal(kg, (c_out,), jnp.float32)
    beta = 0.1 * jax.random.normal(kbeta, (c_out,), jnp.float32)
    running_mean = jnp.zeros((c_out,), jnp.float32)
    running_var = jnp.ones((c_out,), jnp.float32)
    eps = 1e-5
    s = gamma / jnp.sqrt(running_var + eps)                      # (c_out,)
    # Fold BN scale into the weights: x @ (W*s) + b  ==  (x @ W)*s + b.
    w_taps = jnp.transpose(w, (2, 1, 0)) * s[None, None, :]      # (3, C_in, C_out)
    w_im2col = w_taps.reshape(3 * c_in, c_out)
    k_pad = _round_up(3 * c_in, 16)
    if k_pad > 3 * c_in:
        w_im2col = jnp.concatenate(
            [w_im2col, jnp.zeros((k_pad - 3 * c_in, c_out), w_im2col.dtype)], axis=0)
    w_im2col = w_im2col.astype(jnp.bfloat16)
    bias = (beta + s * (conv_bias - running_mean)).reshape(1, c_out).astype(jnp.float32)
    return w_im2col, bias


def _reference(x, params):
    """Pure-JAX (XLA) reference with f32 activations, same folded weights."""
    h = x
    for w, b in params:
        B, L, C = h.shape
        w = w.astype(jnp.float32)[: 3 * C]                       # drop K padding
        zero = jnp.zeros((B, 1, C), h.dtype)
        h_prev = jnp.concatenate([zero, h[:, :-1, :]], axis=1)
        h_next = jnp.concatenate([h[:, 1:, :], zero], axis=1)
        xi = jnp.concatenate([h_prev, h, h_next], axis=-1)       # (B, L, 3*C)
        acc = jnp.einsum("blk,kc->blc", xi, w)
        h = jnp.maximum(acc + b, 0.0)
    return h


if __name__ == "__main__":
    input_dim, hidden_dim = 4, 32
    B, L = 2, 8

    root = jax.random.PRNGKey(0)
    kx, k1, k2, k3 = jax.random.split(root, 4)

    x = jax.random.normal(kx, (B, L, input_dim), jnp.float32)

    params = [
        init_layer(k1, input_dim, hidden_dim),
        init_layer(k2, hidden_dim, hidden_dim),
        init_layer(k3, hidden_dim, hidden_dim),
    ]

    try:
        out = jax.jit(cnn_feature_extractor)(x, params)
        jax.block_until_ready(out)
    except Exception:
        # Fallback for toolchains that cannot lower the sublane->lane relayout
        # reshape used by the lane-dense store path; semantics are identical.
        out = jax.jit(functools.partial(cnn_feature_extractor, lane_dense=False))(x, params)
        jax.block_until_ready(out)

    assert out.shape == (B, L, hidden_dim), out.shape

    # Sanity check against a pure-JAX reference (loose tol: bf16 matmul operands).
    ref = jax.jit(_reference)(x, params)
    np.testing.assert_allclose(np.asarray(out), np.asarray(ref), rtol=5e-2, atol=5e-2)

    print("KERNEL_OK")
</pallas_src>

<mosaic_0001>
module attributes {stable_mosaic.version = 11 : i64} {
  func.func @cnn_kernel(%arg0: i32, %arg1: memref<1x8x4xf32, #tpu.memory_space<vmem>>, %arg2: memref<16x32xbf16, #tpu.memory_space<vmem>>, %arg3: memref<1x32xf32, #tpu.memory_space<vmem>>, %arg4: memref<96x32xbf16, #tpu.memory_space<vmem>>, %arg5: memref<1x32xf32, #tpu.memory_space<vmem>>, %arg6: memref<96x32xbf16, #tpu.memory_space<vmem>>, %arg7: memref<1x32xf32, #tpu.memory_space<vmem>>, %arg8: memref<1x2x128xf32, #tpu.memory_space<vmem>>) attributes {dimension_semantics = [#tpu.dimension_semantics<parallel>], iteration_bounds = array<i64: 2>, scalar_prefetch = 0 : i64, scratch_operands = 0 : i64, tpu.core_type = #tpu.core_type<tc>, window_params = [{transform_indices = @transform_0, window_bounds = array<i64: 1, 8, 4>}, {pipeline_mode = #tpu.pipeline_mode<synchronous>, transform_indices = @transform_1, window_bounds = array<i64: 16, 32>}, {pipeline_mode = #tpu.pipeline_mode<synchronous>, transform_indices = @transform_2, window_bounds = array<i64: 1, 32>}, {pipeline_mode = #tpu.pipeline_mode<synchronous>, transform_indices = @transform_3, window_bounds = array<i64: 96, 32>}, {pipeline_mode = #tpu.pipeline_mode<synchronous>, transform_indices = @transform_4, window_bounds = array<i64: 1, 32>}, {pipeline_mode = #tpu.pipeline_mode<synchronous>, transform_indices = @transform_5, window_bounds = array<i64: 96, 32>}, {pipeline_mode = #tpu.pipeline_mode<synchronous>, transform_indices = @transform_6, window_bounds = array<i64: 1, 32>}, {transform_indices = @transform_7, window_bounds = array<i64: 1, 2, 128>}]} {
    %c0 = arith.constant 0 : index
    %c0_0 = arith.constant 0 : index
    %c0_1 = arith.constant 0 : index
    %0 = vector.load %arg1[%c0, %c0_0, %c0_1] : memref<1x8x4xf32, #tpu.memory_space<vmem>>, vector<1x8x4xf32>
    %1 = vector.shape_cast %0 : vector<1x8x4xf32> to vector<8x4xf32>
    %2 = tpu.iota {dimensions = array<i32: 0>} : vector<8x1xi32>
    %c8_i32 = arith.constant 8 : i32
    %c0_i32 = arith.constant 0 : i32
    %3 = arith.cmpi eq, %c8_i32, %c0_i32 : i32
    %c1_i32 = arith.constant 1 : i32
    %4 = arith.select %3, %c1_i32, %c8_i32 : i32
    %5 = vector.broadcast %4 : i32 to vector<8x1xi32>
    %6 = arith.remsi %2, %5 : vector<8x1xi32>
    %c0_i32_2 = arith.constant 0 : i32
    %7 = vector.broadcast %c0_i32_2 : i32 to vector<8x1xi32>
    %8 = arith.cmpi ne, %6, %7 : vector<8x1xi32>
    %c0_i32_3 = arith.constant 0 : i32
    %9 = vector.broadcast %c0_i32_3 : i32 to vector<8x1xi32>
    %10 = arith.cmpi slt, %6, %9 : vector<8x1xi32>
    %c0_i32_4 = arith.constant 0 : i32
    %11 = arith.cmpi slt, %4, %c0_i32_4 : i32
    %12 = vector.broadcast %11 : i1 to vector<8x1xi1>
    %13 = vector.broadcast %12 : vector<8x1xi1> to vector<8x1xi1>
    %14 = arith.xori %10, %13 : vector<8x1xi1>
    %15 = arith.andi %14, %8 : vector<8x1xi1>
    %16 = vector.broadcast %4 : i32 to vector<8x1xi32>
    %17 = arith.addi %6, %16 : vector<8x1xi32>
    %18 = arith.select %15, %17, %6 : vector<8x1xi1>, vector<8x1xi32>
    %c0_i32_5 = arith.constant 0 : i32
    %19 = vector.broadcast %c0_i32_5 : i32 to vector<8x1xi32>
    %20 = arith.cmpi eq, %18, %19 : vector<8x1xi32>
    %c7_i32 = arith.constant 7 : i32
    %21 = vector.broadcast %c7_i32 : i32 to vector<8x1xi32>
    %22 = arith.cmpi eq, %18, %21 : vector<8x1xi32>
    %c1_i32_6 = arith.constant 1 : i32
    %23 = tpu.dynamic_rotate %1 by %c1_i32_6 dim 0 : vector<8x4xf32>, i32 -> vector<8x4xf32>
    %cst = arith.constant 0.000000e+00 : f32
    %24 = vector.shape_cast %20 : vector<8x1xi1> to vector<8x1xi1>
    %25 = vector.broadcast %24 : vector<8x1xi1> to vector<8x4xi1>
    %26 = vector.broadcast %cst : f32 to vector<8x4xf32>
    %27 = arith.select %25, %26, %23 : vector<8x4xi1>, vector<8x4xf32>
    %c7_i32_7 = arith.constant 7 : i32
    %28 = tpu.dynamic_rotate %1 by %c7_i32_7 dim 0 : vector<8x4xf32>, i32 -> vector<8x4xf32>
    %cst_8 = arith.constant 0.000000e+00 : f32
    %29 = vector.shape_cast %22 : vector<8x1xi1> to vector<8x1xi1>
    %30 = vector.broadcast %29 : vector<8x1xi1> to vector<8x4xi1>
    %31 = vector.broadcast %cst_8 : f32 to vector<8x4xf32>
    %32 = arith.select %30, %31, %28 : vector<8x4xi1>, vector<8x4xf32>
    %cst_9 = arith.constant 0.000000e+00 : f32
    %33 = vector.broadcast %cst_9 : f32 to vector<8x4xf32>
    %34 = tpu.concatenate %27, %1, %32, %33 in 1 : vector<8x4xf32>, vector<8x4xf32>, vector<8x4xf32>, vector<8x4xf32> -> vector<8x16xf32>
    %35 = arith.truncf %34 : vector<8x16xf32> to vector<8x16xbf16>
    %c0_10 = arith.constant 0 : index
    %c0_11 = arith.constant 0 : index
    %36 = vector.load %arg2[%c0_10, %c0_11] : memref<16x32xbf16, #tpu.memory_space<vmem>>, vector<16x32xbf16>
    %cst_12 = arith.constant dense<0.000000e+00> : vector<8x32xf32>
    %37 = tpu.matmul %35, %36, %cst_12 {dimension_numbers = #tpu.dot_dimension_numbers<[1], [0], [0], [1], [0, 0, 1, 1], [], []>} : vector<8x16xbf16>, vector<16x32xbf16>, vector<8x32xf32> -> vector<8x32xf32>
    %c0_13 = arith.constant 0 : index
    %c0_14 = arith.constant 0 : index
    %38 = vector.load %arg3[%c0_13, %c0_14] : memref<1x32xf32, #tpu.memory_space<vmem>>, vector<1x32xf32>
    %39 = vector.broadcast %38 : vector<1x32xf32> to vector<8x32xf32>
    %40 = arith.addf %37, %39 : vector<8x32xf32>
    %cst_15 = arith.constant 0.000000e+00 : f32
    %41 = vector.broadcast %cst_15 : f32 to vector<8x32xf32>
    %42 = arith.maximumf %40, %41 : vector<8x32xf32>
    %c1_i32_16 = arith.constant 1 : i32
    %43 = tpu.dynamic_rotate %42 by %c1_i32_16 dim 0 : vector<8x32xf32>, i32 -> vector<8x32xf32>
    %cst_17 = arith.constant 0.000000e+00 : f32
    %44 = vector.shape_cast %20 : vector<8x1xi1> to vector<8x1xi1>
    %45 = vector.broadcast %44 : vector<8x1xi1> to vector<8x32xi1>
    %46 = vector.broadcast %cst_17 : f32 to vector<8x32xf32>
    %47 = arith.select %45, %46, %43 : vector<8x32xi1>, vector<8x32xf32>
    %c7_i32_18 = arith.constant 7 : i32
    %48 = tpu.dynamic_rotate %42 by %c7_i32_18 dim 0 : vector<8x32xf32>, i32 -> vector<8x32xf32>
    %cst_19 = arith.constant 0.000000e+00 : f32
    %49 = vector.shape_cast %22 : vector<8x1xi1> to vector<8x1xi1>
    %50 = vector.broadcast %49 : vector<8x1xi1> to vector<8x32xi1>
    %51 = vector.broadcast %cst_19 : f32 to vector<8x32xf32>
    %52 = arith.select %50, %51, %48 : vector<8x32xi1>, vector<8x32xf32>
    %53 = tpu.concatenate %47, %42, %52 in 1 : vector<8x32xf32>, vector<8x32xf32>, vector<8x32xf32> -> vector<8x96xf32>
    %54 = arith.truncf %53 : vector<8x96xf32> to vector<8x96xbf16>
    %c0_20 = arith.constant 0 : index
    %c0_21 = arith.constant 0 : index
    %55 = vector.load %arg4[%c0_20, %c0_21] : memref<96x32xbf16, #tpu.memory_space<vmem>>, vector<96x32xbf16>
    %cst_22 = arith.constant dense<0.000000e+00> : vector<8x32xf32>
    %56 = tpu.matmul %54, %55, %cst_22 {dimension_numbers = #tpu.dot_dimension_numbers<[1], [0], [0], [1], [0, 0, 1, 1], [], []>} : vector<8x96xbf16>, vector<96x32xbf16>, vector<8x32xf32> -> vector<8x32xf32>
    %c0_23 = arith.constant 0 : index
    %c0_24 = arith.constant 0 : index
    %57 = vector.load %arg5[%c0_23, %c0_24] : memref<1x32xf32, #tpu.memory_space<vmem>>, vector<1x32xf32>
    %58 = vector.broadcast %57 : vector<1x32xf32> to vector<8x32xf32>
    %59 = arith.addf %56, %58 : vector<8x32xf32>
    %cst_25 = arith.constant 0.000000e+00 : f32
    %60 = vector.broadcast %cst_25 : f32 to vector<8x32xf32>
    %61 = arith.maximumf %59, %60 : vector<8x32xf32>
    %c1_i32_26 = arith.constant 1 : i32
    %62 = tpu.dynamic_rotate %61 by %c1_i32_26 dim 0 : vector<8x32xf32>, i32 -> vector<8x32xf32>
    %cst_27 = arith.constant 0.000000e+00 : f32
    %63 = vector.shape_cast %20 : vector<8x1xi1> to vector<8x1xi1>
    %64 = vector.broadcast %63 : vector<8x1xi1> to vector<8x32xi1>
    %65 = vector.broadcast %cst_27 : f32 to vector<8x32xf32>
    %66 = arith.select %64, %65, %62 : vector<8x32xi1>, vector<8x32xf32>
    %c7_i32_28 = arith.constant 7 : i32
    %67 = tpu.dynamic_rotate %61 by %c7_i32_28 dim 0 : vector<8x32xf32>, i32 -> vector<8x32xf32>
    %cst_29 = arith.constant 0.000000e+00 : f32
    %68 = vector.shape_cast %22 : vector<8x1xi1> to vector<8x1xi1>
    %69 = vector.broadcast %68 : vector<8x1xi1> to vector<8x32xi1>
    %70 = vector.broadcast %cst_29 : f32 to vector<8x32xf32>
    %71 = arith.select %69, %70, %67 : vector<8x32xi1>, vector<8x32xf32>
    %72 = tpu.concatenate %66, %61, %71 in 1 : vector<8x32xf32>, vector<8x32xf32>, vector<8x32xf32> -> vector<8x96xf32>
    %73 = arith.truncf %72 : vector<8x96xf32> to vector<8x96xbf16>
    %c0_30 = arith.constant 0 : index
    %c0_31 = arith.constant 0 : index
    %74 = vector.load %arg6[%c0_30, %c0_31] : memref<96x32xbf16, #tpu.memory_space<vmem>>, vector<96x32xbf16>
    %cst_32 = arith.constant dense<0.000000e+00> : vector<8x32xf32>
    %75 = tpu.matmul %73, %74, %cst_32 {dimension_numbers = #tpu.dot_dimension_numbers<[1], [0], [0], [1], [0, 0, 1, 1], [], []>} : vector<8x96xbf16>, vector<96x32xbf16>, vector<8x32xf32> -> vector<8x32xf32>
    %c0_33 = arith.constant 0 : index
    %c0_34 = arith.constant 0 : index
    %76 = vector.load %arg7[%c0_33, %c0_34] : memref<1x32xf32, #tpu.memory_space<vmem>>, vector<1x32xf32>
    %77 = vector.broadcast %76 : vector<1x32xf32> to vector<8x32xf32>
    %78 = arith.addf %75, %77 : vector<8x32xf32>
    %cst_35 = arith.constant 0.000000e+00 : f32
    %79 = vector.broadcast %cst_35 : f32 to vector<8x32xf32>
    %80 = arith.maximumf %78, %79 : vector<8x32xf32>
    %81 = vector.shape_cast %80 : vector<8x32xf32> to vector<1x2x128xf32>
    %c0_36 = arith.constant 0 : index
    %c0_37 = arith.constant 0 : index
    %c0_38 = arith.constant 0 : index
    %82 = vector.load %arg8[%c0_36, %c0_37, %c0_38] : memref<1x2x128xf32, #tpu.memory_space<vmem>>, vector<1x2x128xf32>
    tpu.vector_store %arg8[%c0_36, %c0_37, %c0_38], %81 {strides = array<i32>} : memref<1x2x128xf32, #tpu.memory_space<vmem>>, vector<1x2x128xf32>,
    return
  }
  func.func @transform_0(%arg0: i32) -> (i32, i32, i32) {
    %c0_i32 = arith.constant 0 : i32
    %c0_i32_0 = arith.constant 0 : i32
    %c0_i32_1 = arith.constant 0 : i32
    return %arg0, %c0_i32, %c0_i32_0 : i32, i32, i32
  }
  func.func @transform_1(%arg0: i32) -> (i32, i32) {
    %c0_i32 = arith.constant 0 : i32
    %c0_i32_0 = arith.constant 0 : i32
    %c0_i32_1 = arith.constant 0 : i32
    return %c0_i32, %c0_i32_0 : i32, i32
  }
  func.func @transform_2(%arg0: i32) -> (i32, i32) {
    %c0_i32 = arith.constant 0 : i32
    %c0_i32_0 = arith.constant 0 : i32
    %c0_i32_1 = arith.constant 0 : i32
    return %c0_i32, %c0_i32_0 : i32, i32
  }
  func.func @transform_3(%arg0: i32) -> (i32, i32) {
    %c0_i32 = arith.constant 0 : i32
    %c0_i32_0 = arith.constant 0 : i32
    %c0_i32_1 = arith.constant 0 : i32
    return %c0_i32, %c0_i32_0 : i32, i32
  }
  func.func @transform_4(%arg0: i32) -> (i32, i32) {
    %c0_i32 = arith.constant 0 : i32
    %c0_i32_0 = arith.constant 0 : i32
    %c0_i32_1 = arith.constant 0 : i32
    return %c0_i32, %c0_i32_0 : i32, i32
  }
  func.func @transform_5(%arg0: i32) -> (i32, i32) {
    %c0_i32 = arith.constant 0 : i32
    %c0_i32_0 = arith.constant 0 : i32
    %c0_i32_1 = arith.constant 0 : i32
    return %c0_i32, %c0_i32_0 : i32, i32
  }
  func.func @transform_6(%arg0: i32) -> (i32, i32) {
    %c0_i32 = arith.constant 0 : i32
    %c0_i32_0 = arith.constant 0 : i32
    %c0_i32_1 = arith.constant 0 : i32
    return %c0_i32, %c0_i32_0 : i32, i32
  }
  func.func @transform_7(%arg0: i32) -> (i32, i32, i32) {
    %c0_i32 = arith.constant 0 : i32
    %c0_i32_0 = arith.constant 0 : i32
    %c0_i32_1 = arith.constant 0 : i32
    return %arg0, %c0_i32, %c0_i32_0 : i32, i32, i32
  }
}

module attributes {stable_mosaic.version = 11 : i64} {
  func.func @cnn_kernel(%arg0: i32, %arg1: memref<1x8x4xf32, #tpu.memory_space<vmem>>, %arg2: memref<16x32xbf16, #tpu.memory_space<vmem>>, %arg3: memref<1x32xf32, #tpu.memory_space<vmem>>, %arg4: memref<96x32xbf16, #tpu.memory_space<vmem>>, %arg5: memref<1x32xf32, #tpu.memory_space<vmem>>, %arg6: memref<96x32xbf16, #tpu.memory_space<vmem>>, %arg7: memref<1x32xf32, #tpu.memory_space<vmem>>, %arg8: memref<1x8x32xf32, #tpu.memory_space<vmem>>) attributes {dimension_semantics = [#tpu.dimension_semantics<parallel>], iteration_bounds = array<i64: 2>, scalar_prefetch = 0 : i64, scratch_operands = 0 : i64, tpu.core_type = #tpu.core_type<tc>, window_params = [{transform_indices = @transform_0, window_bounds = array<i64: 1, 8, 4>}, {pipeline_mode = #tpu.pipeline_mode<synchronous>, transform_indices = @transform_1, window_bounds = array<i64: 16, 32>}, {pipeline_mode = #tpu.pipeline_mode<synchronous>, transform_indices = @transform_2, window_bounds = array<i64: 1, 32>}, {pipeline_mode = #tpu.pipeline_mode<synchronous>, transform_indices = @transform_3, window_bounds = array<i64: 96, 32>}, {pipeline_mode = #tpu.pipeline_mode<synchronous>, transform_indices = @transform_4, window_bounds = array<i64: 1, 32>}, {pipeline_mode = #tpu.pipeline_mode<synchronous>, transform_indices = @transform_5, window_bounds = array<i64: 96, 32>}, {pipeline_mode = #tpu.pipeline_mode<synchronous>, transform_indices = @transform_6, window_bounds = array<i64: 1, 32>}, {transform_indices = @transform_7, window_bounds = array<i64: 1, 8, 32>}]} {
    %c0 = arith.constant 0 : index
    %c0_0 = arith.constant 0 : index
    %c0_1 = arith.constant 0 : index
    %0 = vector.load %arg1[%c0, %c0_0, %c0_1] : memref<1x8x4xf32, #tpu.memory_space<vmem>>, vector<1x8x4xf32>
    %1 = vector.shape_cast %0 : vector<1x8x4xf32> to vector<8x4xf32>
    %2 = tpu.iota {dimensions = array<i32: 0>} : vector<8x1xi32>
    %c8_i32 = arith.constant 8 : i32
    %c0_i32 = arith.constant 0 : i32
    %3 = arith.cmpi eq, %c8_i32, %c0_i32 : i32
    %c1_i32 = arith.constant 1 : i32
    %4 = arith.select %3, %c1_i32, %c8_i32 : i32
    %5 = vector.broadcast %4 : i32 to vector<8x1xi32>
    %6 = arith.remsi %2, %5 : vector<8x1xi32>
    %c0_i32_2 = arith.constant 0 : i32
    %7 = vector.broadcast %c0_i32_2 : i32 to vector<8x1xi32>
    %8 = arith.cmpi ne, %6, %7 : vector<8x1xi32>
    %c0_i32_3 = arith.constant 0 : i32
    %9 = vector.broadcast %c0_i32_3 : i32 to vector<8x1xi32>
    %10 = arith.cmpi slt, %6, %9 : vector<8x1xi32>
    %c0_i32_4 = arith.constant 0 : i32
    %11 = arith.cmpi slt, %4, %c0_i32_4 : i32
    %12 = vector.broadcast %11 : i1 to vector<8x1xi1>
    %13 = vector.broadcast %12 : vector<8x1xi1> to vector<8x1xi1>
    %14 = arith.xori %10, %13 : vector<8x1xi1>
    %15 = arith.andi %14, %8 : vector<8x1xi1>
    %16 = vector.broadcast %4 : i32 to vector<8x1xi32>
    %17 = arith.addi %6, %16 : vector<8x1xi32>
    %18 = arith.select %15, %17, %6 : vector<8x1xi1>, vector<8x1xi32>
    %c0_i32_5 = arith.constant 0 : i32
    %19 = vector.broadcast %c0_i32_5 : i32 to vector<8x1xi32>
    %20 = arith.cmpi eq, %18, %19 : vector<8x1xi32>
    %c7_i32 = arith.constant 7 : i32
    %21 = vector.broadcast %c7_i32 : i32 to vector<8x1xi32>
    %22 = arith.cmpi eq, %18, %21 : vector<8x1xi32>
    %c1_i32_6 = arith.constant 1 : i32
    %23 = tpu.dynamic_rotate %1 by %c1_i32_6 dim 0 : vector<8x4xf32>, i32 -> vector<8x4xf32>
    %cst = arith.constant 0.000000e+00 : f32
    %24 = vector.shape_cast %20 : vector<8x1xi1> to vector<8x1xi1>
    %25 = vector.broadcast %24 : vector<8x1xi1> to vector<8x4xi1>
    %26 = vector.broadcast %cst : f32 to vector<8x4xf32>
    %27 = arith.select %25, %26, %23 : vector<8x4xi1>, vector<8x4xf32>
    %c7_i32_7 = arith.constant 7 : i32
    %28 = tpu.dynamic_rotate %1 by %c7_i32_7 dim 0 : vector<8x4xf32>, i32 -> vector<8x4xf32>
    %cst_8 = arith.constant 0.000000e+00 : f32
    %29 = vector.shape_cast %22 : vector<8x1xi1> to vector<8x1xi1>
    %30 = vector.broadcast %29 : vector<8x1xi1> to vector<8x4xi1>
    %31 = vector.broadcast %cst_8 : f32 to vector<8x4xf32>
    %32 = arith.select %30, %31, %28 : vector<8x4xi1>, vector<8x4xf32>
    %cst_9 = arith.constant 0.000000e+00 : f32
    %33 = vector.broadcast %cst_9 : f32 to vector<8x4xf32>
    %34 = tpu.concatenate %27, %1, %32, %33 in 1 : vector<8x4xf32>, vector<8x4xf32>, vector<8x4xf32>, vector<8x4xf32> -> vector<8x16xf32>
    %35 = arith.truncf %34 : vector<8x16xf32> to vector<8x16xbf16>
    %c0_10 = arith.constant 0 : index
    %c0_11 = arith.constant 0 : index
    %36 = vector.load %arg2[%c0_10, %c0_11] : memref<16x32xbf16, #tpu.memory_space<vmem>>, vector<16x32xbf16>
    %cst_12 = arith.constant dense<0.000000e+00> : vector<8x32xf32>
    %37 = tpu.matmul %35, %36, %cst_12 {dimension_numbers = #tpu.dot_dimension_numbers<[1], [0], [0], [1], [0, 0, 1, 1], [], []>} : vector<8x16xbf16>, vector<16x32xbf16>, vector<8x32xf32> -> vector<8x32xf32>
    %c0_13 = arith.constant 0 : index
    %c0_14 = arith.constant 0 : index
    %38 = vector.load %arg3[%c0_13, %c0_14] : memref<1x32xf32, #tpu.memory_space<vmem>>, vector<1x32xf32>
    %39 = vector.broadcast %38 : vector<1x32xf32> to vector<8x32xf32>
    %40 = arith.addf %37, %39 : vector<8x32xf32>
    %cst_15 = arith.constant 0.000000e+00 : f32
    %41 = vector.broadcast %cst_15 : f32 to vector<8x32xf32>
    %42 = arith.maximumf %40, %41 : vector<8x32xf32>
    %c1_i32_16 = arith.constant 1 : i32
    %43 = tpu.dynamic_rotate %42 by %c1_i32_16 dim 0 : vector<8x32xf32>, i32 -> vector<8x32xf32>
    %cst_17 = arith.constant 0.000000e+00 : f32
    %44 = vector.shape_cast %20 : vector<8x1xi1> to vector<8x1xi1>
    %45 = vector.broadcast %44 : vector<8x1xi1> to vector<8x32xi1>
    %46 = vector.broadcast %cst_17 : f32 to vector<8x32xf32>
    %47 = arith.select %45, %46, %43 : vector<8x32xi1>, vector<8x32xf32>
    %c7_i32_18 = arith.constant 7 : i32
    %48 = tpu.dynamic_rotate %42 by %c7_i32_18 dim 0 : vector<8x32xf32>, i32 -> vector<8x32xf32>
    %cst_19 = arith.constant 0.000000e+00 : f32
    %49 = vector.shape_cast %22 : vector<8x1xi1> to vector<8x1xi1>
    %50 = vector.broadcast %49 : vector<8x1xi1> to vector<8x32xi1>
    %51 = vector.broadcast %cst_19 : f32 to vector<8x32xf32>
    %52 = arith.select %50, %51, %48 : vector<8x32xi1>, vector<8x32xf32>
    %53 = tpu.concatenate %47, %42, %52 in 1 : vector<8x32xf32>, vector<8x32xf32>, vector<8x32xf32> -> vector<8x96xf32>
    %54 = arith.truncf %53 : vector<8x96xf32> to vector<8x96xbf16>
    %c0_20 = arith.constant 0 : index
    %c0_21 = arith.constant 0 : index
    %55 = vector.load %arg4[%c0_20, %c0_21] : memref<96x32xbf16, #tpu.memory_space<vmem>>, vector<96x32xbf16>
    %cst_22 = arith.constant dense<0.000000e+00> : vector<8x32xf32>
    %56 = tpu.matmul %54, %55, %cst_22 {dimension_numbers = #tpu.dot_dimension_numbers<[1], [0], [0], [1], [0, 0, 1, 1], [], []>} : vector<8x96xbf16>, vector<96x32xbf16>, vector<8x32xf32> -> vector<8x32xf32>
    %c0_23 = arith.constant 0 : index
    %c0_24 = arith.constant 0 : index
    %57 = vector.load %arg5[%c0_23, %c0_24] : memref<1x32xf32, #tpu.memory_space<vmem>>, vector<1x32xf32>
    %58 = vector.broadcast %57 : vector<1x32xf32> to vector<8x32xf32>
    %59 = arith.addf %56, %58 : vector<8x32xf32>
    %cst_25 = arith.constant 0.000000e+00 : f32
    %60 = vector.broadcast %cst_25 : f32 to vector<8x32xf32>
    %61 = arith.maximumf %59, %60 : vector<8x32xf32>
    %c1_i32_26 = arith.constant 1 : i32
    %62 = tpu.dynamic_rotate %61 by %c1_i32_26 dim 0 : vector<8x32xf32>, i32 -> vector<8x32xf32>
    %cst_27 = arith.constant 0.000000e+00 : f32
    %63 = vector.shape_cast %20 : vector<8x1xi1> to vector<8x1xi1>
    %64 = vector.broadcast %63 : vector<8x1xi1> to vector<8x32xi1>
    %65 = vector.broadcast %cst_27 : f32 to vector<8x32xf32>
    %66 = arith.select %64, %65, %62 : vector<8x32xi1>, vector<8x32xf32>
    %c7_i32_28 = arith.constant 7 : i32
    %67 = tpu.dynamic_rotate %61 by %c7_i32_28 dim 0 : vector<8x32xf32>, i32 -> vector<8x32xf32>
    %cst_29 = arith.constant 0.000000e+00 : f32
    %68 = vector.shape_cast %22 : vector<8x1xi1> to vector<8x1xi1>
    %69 = vector.broadcast %68 : vector<8x1xi1> to vector<8x32xi1>
    %70 = vector.broadcast %cst_29 : f32 to vector<8x32xf32>
    %71 = arith.select %69, %70, %67 : vector<8x32xi1>, vector<8x32xf32>
    %72 = tpu.concatenate %66, %61, %71 in 1 : vector<8x32xf32>, vector<8x32xf32>, vector<8x32xf32> -> vector<8x96xf32>
    %73 = arith.truncf %72 : vector<8x96xf32> to vector<8x96xbf16>
    %c0_30 = arith.constant 0 : index
    %c0_31 = arith.constant 0 : index
    %74 = vector.load %arg6[%c0_30, %c0_31] : memref<96x32xbf16, #tpu.memory_space<vmem>>, vector<96x32xbf16>
    %cst_32 = arith.constant dense<0.000000e+00> : vector<8x32xf32>
    %75 = tpu.matmul %73, %74, %cst_32 {dimension_numbers = #tpu.dot_dimension_numbers<[1], [0], [0], [1], [0, 0, 1, 1], [], []>} : vector<8x96xbf16>, vector<96x32xbf16>, vector<8x32xf32> -> vector<8x32xf32>
    %c0_33 = arith.constant 0 : index
    %c0_34 = arith.constant 0 : index
    %76 = vector.load %arg7[%c0_33, %c0_34] : memref<1x32xf32, #tpu.memory_space<vmem>>, vector<1x32xf32>
    %77 = vector.broadcast %76 : vector<1x32xf32> to vector<8x32xf32>
    %78 = arith.addf %75, %77 : vector<8x32xf32>
    %cst_35 = arith.constant 0.000000e+00 : f32
    %79 = vector.broadcast %cst_35 : f32 to vector<8x32xf32>
    %80 = arith.maximumf %78, %79 : vector<8x32xf32>
    %81 = vector.shape_cast %80 : vector<8x32xf32> to vector<1x8x32xf32>
    %c0_36 = arith.constant 0 : index
    %c0_37 = arith.constant 0 : index
    %c0_38 = arith.constant 0 : index
    %82 = vector.load %arg8[%c0_36, %c0_37, %c0_38] : memref<1x8x32xf32, #tpu.memory_space<vmem>>, vector<1x8x32xf32>
    tpu.vector_store %arg8[%c0_36, %c0_37, %c0_38], %81 {strides = array<i32>} : memref<1x8x32xf32, #tpu.memory_space<vmem>>, vector<1x8x32xf32>,
    return
  }
  func.func @transform_0(%arg0: i32) -> (i32, i32, i32) {
    %c0_i32 = arith.constant 0 : i32
    %c0_i32_0 = arith.constant 0 : i32
    %c0_i32_1 = arith.constant 0 : i32
    return %arg0, %c0_i32, %c0_i32_0 : i32, i32, i32
  }
  func.func @transform_1(%arg0: i32) -> (i32, i32) {
    %c0_i32 = arith.constant 0 : i32
    %c0_i32_0 = arith.constant 0 : i32
    %c0_i32_1 = arith.constant 0 : i32
    return %c0_i32, %c0_i32_0 : i32, i32
  }
  func.func @transform_2(%arg0: i32) -> (i32, i32) {
    %c0_i32 = arith.constant 0 : i32
    %c0_i32_0 = arith.constant 0 : i32
    %c0_i32_1 = arith.constant 0 : i32
    return %c0_i32, %c0_i32_0 : i32, i32
  }
  func.func @transform_3(%arg0: i32) -> (i32, i32) {
    %c0_i32 = arith.constant 0 : i32
    %c0_i32_0 = arith.constant 0 : i32
    %c0_i32_1 = arith.constant 0 : i32
    return %c0_i32, %c0_i32_0 : i32, i32
  }
  func.func @transform_4(%arg0: i32) -> (i32, i32) {
    %c0_i32 = arith.constant 0 : i32
    %c0_i32_0 = arith.constant 0 : i32
    %c0_i32_1 = arith.constant 0 : i32
    return %c0_i32, %c0_i32_0 : i32, i32
  }
  func.func @transform_5(%arg0: i32) -> (i32, i32) {
    %c0_i32 = arith.constant 0 : i32
    %c0_i32_0 = arith.constant 0 : i32
    %c0_i32_1 = arith.constant 0 : i32
    return %c0_i32, %c0_i32_0 : i32, i32
  }
  func.func @transform_6(%arg0: i32) -> (i32, i32) {
    %c0_i32 = arith.constant 0 : i32
    %c0_i32_0 = arith.constant 0 : i32
    %c0_i32_1 = arith.constant 0 : i32
    return %c0_i32, %c0_i32_0 : i32, i32
  }
  func.func @transform_7(%arg0: i32) -> (i32, i32, i32) {
    %c0_i32 = arith.constant 0 : i32
    %c0_i32_0 = arith.constant 0 : i32
    %c0_i32_1 = arith.constant 0 : i32
    return %arg0, %c0_i32, %c0_i32_0 : i32, i32, i32
  }
}

</mosaic_0001>

<bundles_post_ra>
// kernel: cnn_feature_extractor.1
= control target key start
LH: loop header
LB: loop body
LE: loop exit
PB: predicated region body
PF: predicated region fallthrough
CT: control target
= control target key end

     0   :  { %12 = vsyncpa [#allocation3], 0  ;;  %s1130_s0 = inlined_call_operand.vmem [shape: f32[2,8,4], index: 0, kind: input, shape index: {}]   ;;  %s1131_s1 = inlined_call_operand.vmem [shape: bf16[16,32], index: 1, kind: input, shape index: {}]   ;;  %s1132_s2 = inlined_call_operand.vmem [shape: f32[1,32], index: 2, kind: input, shape index: {}]   ;;  %s1133_s3 = inlined_call_operand.vmem [shape: bf16[96,32], index: 3, kind: input, shape index: {}]   ;;  %s1134_s4 = inlined_call_operand.vmem [shape: f32[1,32], index: 4, kind: input, shape index: {}]   ;;  %s1135_s5 = inlined_call_operand.vmem [shape: bf16[96,32], index: 5, kind: input, shape index: {}]   ;;  %s1136_s6 = inlined_call_operand.vmem [shape: f32[1,32], index: 6, kind: input, shape index: {}]   ;;  %s1137_s7 = inlined_call_operand.hbm [shape: f32[2,8,32], index: 7, kind: output, shape index: {}]  }
   0x1   :  { %14 = vsyncpa [#allocation3 + $0x1], 0  ;;  %s932_s24 = smov 0   ;;  %s934_s25 = smov 0  }
   0x2   :  { %s936_s26 = smov 0   ;;  %s938_s27 = smov 0  }
   0x3 LB: > { %s953_s28 = sadd.s32 4294967295, %s883_s27   ;;  %s680_s29 = sadd.s32 4294967294, %s883_s27   ;;  %s883_s27 = sphi %s938_s27, %s1147_s27   ;;  %s879_s26 = sphi %s936_s26, %s1146_s26   ;;  %s875_s25 = sphi %s934_s25, %s1145_s25   ;;  %s871_s24 = sphi %s932_s24, %s1144_s24  }
   0x4   : > { %s957_s30 = sadd.s32 1, %s883_s27   ;;  %s179_s8 = sadd.s32 1, %s879_s26 }
   0x5   : > { %s176_s9 = ssub.s32 %s883_s27, %s957_s30  ;;  %p189_p0 = scmp.ne.s32.totalorder %s879_s26, %s875_s25 }
   0x6   : > { %p177_p1 = scmp.eq.s32.totalorder %s176_s9, 0  ;;  %p190_p2 = scmp.eq.s32.totalorder %s953_s28, 1 }
   0x7   : > { %p195_p3 = scmp.ne.s32.totalorder %s875_s25, %s871_s24  ;;  %p196_p4 = scmp.eq.s32.totalorder %s680_s29, 1 }
   0x8   : > { %s968_s10 = scalar_select %p177_p1, %s879_s26, %s179_s8  }
   0x9   : > { %p970_p5 = por %p190_p2, %p189_p0  ;;  %p974_p6 = por %p196_p4, %p195_p3 }
   0xa   : > { %p683_p7 = scmp.ge.s32.totalorder %s883_s27, 1  ;;  %p239_p8 = scmp.lt.s32.totalorder %s883_s27, 3 }
   0xc   : > { %p240_p9 = pnand %p683_p7, %p239_p8 }
   0xd   : > { %p270_p10 = scmp.lt.s32.totalorder (!%p240_p9), %s953_s28, 1  ;;  %v276_v0 = vlaneseq (!%p240_p9)  ;;  %v808_v1 = vld [vmem:[%s1131_s1] sm:$0xff] (!%p240_p9)   ;;  %v885_v3 = vmov (!%p240_p9), 0.0   ;;  %vm886_vm0 = vmmov (!%p240_p9), 0   ;;  %s887_s20 = smov (!%p240_p9), 4   ;;  %vm308_vm3 = vcmask (!%p240_p9), 31744  }
   0xe   : > { %243 = sbr.rel (%p240_p9) target bundleno = 1054 (0x41e), region = 48  ;;  %725 = vmatprep.subr.bf16.mxu0 (!%p240_p9), %v885_v3  ;;  %731 = vmatprep.subr.bf16.mxu1 (!%p240_p9), %v885_v3  ;;  %s888_s21 = smov (!%p240_p9), 8   ;;  %vm310_vm4 = vcmask (!%p240_p9), 64512   ;;  %vm312_vm5 = vcmask (!%p240_p9), 97280   ;;  %vm330_vm6 = vcmask (!%p240_p9), 130048   ;;  %v809_v18 = vld [vmem:[%s1133_s3] sm:$0xff] (!%p240_p9)  }
   0xf   : > { %v277_v2 = vshrl.u32 (!%p240_p9), %v276_v0, 7  ;;  %726 = vmatpush3.bf16.msra.mxu0 (!%p240_p9), %v808_v1  ;;  %727 = vmatprep.mubr.msk.bf16.mxu0 (!%p240_p9), %vm886_vm0, %v885_v3  ;;  %v810_v19 = vld [vmem:[%s1133_s3 + $0x8] sm:$0xff] (!%p240_p9)   ;;  %v811_v20 = vld [vmem:[%s1133_s3 + $0x10] sm:$0xff] (!%p240_p9)   ;;  %v812_v21 = vld [vmem:[%s1133_s3 + $0x18] sm:$0xff] (!%p240_p9)   ;;  %s889_s22 = smov (!%p240_p9), 32   ;;  %s890_s23 = smov (!%p240_p9), 64  }
  0x10   : > { %743 = vmatprep.mubr.msk.bf16.mxu1 (!%p240_p9), %vm886_vm0, %v885_v3  ;;  %747 = vmatprep.subr.bf16.mxu0 (!%p240_p9), %v885_v3  ;;  %v813_v22 = vld [vmem:[%s1133_s3 + $0x20] sm:$0xff] (!%p240_p9)   ;;  %v814_v23 = vld [vmem:[%s1133_s3 + $0x28] sm:$0xff] (!%p240_p9)   ;;  %vm387_vm7 = vcmask (!%p240_p9), 261120   ;;  %vm389_vm8 = vcmask (!%p240_p9), 523264   ;;  %vm447_vm9 = vcmask (!%p240_p9), 785408   ;;  %v817_v42 = vld [vmem:[%s1135_s5 + $0x10] sm:$0xff] (!%p240_p9)  }
  0x11   : > { %v282_v4 = vand.u32 (!%p240_p9), 7, %v277_v2  ;;  %732 = vmatpush3.bf16.msra.mxu1 (!%p240_p9), %v809_v18  ;;  %v686_v24 = vld [vmem:[%s1132_s2] ss:$0 sm:$0xff] (!%p240_p9)  ;;  %v816_v41 = vld [vmem:[%s1135_s5 + $0x8] sm:$0xff] (!%p240_p9)   ;;  %v818_v43 = vld [vmem:[%s1135_s5 + $0x18] sm:$0xff] (!%p240_p9)  }
  0x12   : > { %733 = vmatprep.subr.bf16.mxu1 (!%p240_p9), %v885_v3  ;;  %v815_v40 = vld [vmem:[%s1135_s5] sm:$0xff] (!%p240_p9)   ;;  %v820_v45 = vld [vmem:[%s1135_s5 + $0x28] sm:$0xff] (!%p240_p9)  }
  0x13   : > { %vm995_vm1 = vcmp.eq.s32.totalorder (!%p240_p9), %v282_v4, 7  ;;  %vm1001_vm2 = vcmp.eq.s32.totalorder (!%p240_p9), %v282_v4, 0  ;;  %v819_v44 = vld [vmem:[%s1135_s5 + $0x20] sm:$0xff] (!%p240_p9)  }
  0x14   : > { %v689_v46 = vld [vmem:[%s1134_s4] ss:$0 sm:$0xff] (!%p240_p9) }
  0x15   : > { %s271_s15 = scalar_select %p270_p10, %s953_s28, 1  ;;  %734 = vmatpush3.bf16.msra.mxu1 %v810_v19  ;;  %v697_v62 = vld [vmem:[%s1136_s6] ss:$0 sm:$0xff] }
  0x16   : > { %735 = vmatprep.subr.bf16.mxu1 %v885_v3 }
  0x17   : > { %s685_s16 = sshll.u32 %s271_s15, 3 }
  0x18   : > { %s273_s19 = scalar_lea.vmem %s1130_s0, %s685_s16 }
  0x19   : > { %v275_v5 = vld [vmem:[%s273_s19] sm:$0xff]  ;;  %736 = vmatpush3.bf16.msra.mxu1 %v811_v20 }
  0x1a   : > { %301 = vrot.lane.b32.xlu0 %v275_v5, %s887_s20  ;;  %v296_v7 = vrot.slane %v275_v5, 1  ;;  %v292_v9 = vrot.slane %v275_v5, 7  ;;  %737 = vmatprep.subr.bf16.mxu1 %v885_v3 }
  0x1c   : > { %v299_v8 = vsel %vm995_vm1, 0.0, %v296_v7  ;;  %v295_v12 = vsel %vm1001_vm2, 0.0, %v292_v9 }
  0x1d   : > { %738 = vmatpush3.bf16.msra.mxu1 %v812_v21 }
  0x1e   : > { %305 = vrot.lane.b32.xlu0 %v299_v8, %s888_s21  ;;  %739 = vmatprep.subr.bf16.mxu1 %v885_v3  ;;  %s891_s21 = smov [#allocation2]  }
  0x1f   : > { %s825_s29 = sshll.u32 %s891_s21, 4  ;;  %s826_s29 = int_to_ptr.vmem [resolvable:$false] %s825_s29 }
  0x20   : > { %s827_s8 = scalar_lea.vmem %s826_s29, 256 }
  0x21   : > { %740 = vmatpush3.bf16.msra.mxu1 %v813_v22 }
  0x22   : > { %741 = vmatprep.subr.bf16.mxu1 %v885_v3 }
  0x25   : > { %742 = vmatpush3.bf16.msra.mxu1 %v814_v23 }
  0x8c   : > { %v302_v11 = vpop.permute.xlu0 %301 }
  0x8d   : > { %v309_v13 = vsel %vm308_vm3, %v295_v12, %v302_v11 }
  0x90   : > { %v306_v14 = vpop.permute.xlu0 %305 }
  0x91   : > { %v311_v15 = vsel %vm310_vm4, %v309_v13, %v306_v14 }
  0x92   : > { %v313_v16 = vsel %vm312_vm5, %v311_v15, 0.0 }
  0x93   : > { %v314_v17 = vpack.c.bf16 %v313_v16, %v313_v16 }
  0x95   : > { %728 = vmatmul.mubr.msk.bf16.vlgmr.msra.gmra.mrb[0].mxu0 %vm330_vm6, %v314_v17 }
  0x96   : > { %759 = vmatprep.mubr.msk.bf16.mxu0 %vm886_vm0, %v885_v3  ;;  %748 = vmatpush3.bf16.msra.mxu0 %v815_v40 }
  0x97   : > { %749 = vmatprep.subr.bf16.mxu0 %v885_v3 }
  0x9a   : > { %750 = vmatpush3.bf16.msra.mxu0 %v816_v41 }
  0x9b   : > { %751 = vmatprep.subr.bf16.mxu0 %v885_v3 }
  0x9e   : > { %752 = vmatpush3.bf16.msra.mxu0 %v817_v42 }
  0x9f   : > { %753 = vmatprep.subr.bf16.mxu0 %v885_v3 }
  0xa2   : > { %754 = vmatpush3.bf16.msra.mxu0 %v818_v43 }
  0xa3   : > { %755 = vmatprep.subr.bf16.mxu0 %v885_v3 }
  0xa6   : > { %756 = vmatpush3.bf16.msra.mxu0 %v819_v44 }
  0xa7   : > { %757 = vmatprep.subr.bf16.mxu0 %v885_v3 }
  0xaa   : > { %758 = vmatpush3.bf16.msra.mxu0 %v820_v45 }
 0x168   : > { %v368_v25 = vpop.f32.mrb[0].mxu0 }
 0x169   : > { %v369_v26 = vadd.f32 %v686_v24, %v368_v25  ;;  %v729_v27 = vpop.f32.mrb[1].mxu0 }
 0x16a   : > { %v371_v28 = vpop.f32.mrb[2].mxu0 }
 0x16b   : > { %v374_v29 = vmax.f32 %v369_v26, 0.0  ;;  %v730_v30 = vpop.f32.mrb[3].mxu0 }
 0x16d   : > { %380 = vrot.lane.b32.xlu1 %v374_v29, %s889_s22  ;;  %v377_v31 = vrot.slane %v374_v29, 1  ;;  %v375_v33 = vrot.slane %v374_v29, 7 }
 0x16f   : > { %v378_v32 = vsel %vm995_vm1, 0.0, %v377_v31  ;;  %v376_v35 = vsel %vm1001_vm2, 0.0, %v375_v33 }
 0x171   : > { %384 = vrot.lane.b32.xlu1 %v378_v32, %s890_s23 }
 0x1df   : > { %v381_v34 = vpop.permute.xlu1 %380 }
 0x1e0   : > { %v388_v36 = vsel %vm387_vm7, %v376_v35, %v381_v34 }
 0x1e3   : > { %v385_v37 = vpop.permute.xlu1 %384 }
 0x1e4   : > { %v390_v38 = vsel %vm389_vm8, %v388_v36, %v385_v37 }
 0x1e5   : > { %v391_v39 = vpack.c.bf16 %v390_v38, %v390_v38 }
 0x1e7   : > { %744 = vmatmul.mubr.msk.bf16.vlgmr.msra.gmra.mrb[0].mxu1 %vm447_vm9, %v391_v39 }
 0x2ba   : > { %v485_v47 = vpop.f32.mrb[0].mxu1 }
 0x2bb   : > { %v486_v48 = vadd.f32 %v689_v46, %v485_v47  ;;  %v745_v49 = vpop.f32.mrb[1].mxu1 }
 0x2bc   : > { %v488_v50 = vpop.f32.mrb[2].mxu1 }
 0x2bd   : > { %v491_v51 = vmax.f32 %v486_v48, 0.0  ;;  %v746_v52 = vpop.f32.mrb[3].mxu1 }
 0x2bf   : > { %497 = vrot.lane.b32.xlu0 %v491_v51, %s889_s22  ;;  %v494_v53 = vrot.slane %v491_v51, 1  ;;  %v492_v55 = vrot.slane %v491_v51, 7  ;;  %s267_s22 = sand.u32 1, %s875_s25  }
 0x2c0   : > { %s684_s9 = sshll.u32 %s267_s22, 3 }
 0x2c1   : > { %v495_v54 = vsel %vm995_vm1, 0.0, %v494_v53  ;;  %v493_v57 = vsel %vm1001_vm2, 0.0, %v492_v55  ;;  %s269_s15 = scalar_lea.vmem [#allocation2], %s684_s9 }
 0x2c2   : > { %501 = vrot.lane.b32.xlu1 %v495_v54, %s890_s23  ;;  %s706_s23 = sshll.u32 %s953_s28, 7  ;;  %s621_s16 = sshll.u32 %s269_s15, 4  ;;  %s1089_s16 = int_to_ptr.vmem [resolvable:$true] %s621_s16 }
 0x2c3   : > { %s1087_s19 = scalar_lea.hbm %s1137_s7, %s706_s23  ;;  %s608_s28 = scalar_lea.sflag [#allocation3], %s267_s22 }
 0x2c4   : > { %s821_s20 = scalar_lea.vmem %s1089_s16, 128  ;;  %p828_p0 = scmp.lt.s32.totalorder %s1089_s16, %s826_s29 }
 0x2c5   : > { %p822_p11 = scmp.ne.s32.totalorder %s1089_s16, %s821_s20  ;;  %p829_p1 = scmp.lt.s32.totalorder %s827_s8, %s821_s20 }
 0x2c7   : > { %p823_p12 = pnand %p822_p11, %p970_p5  ;;  %p830_p2 = por %p829_p1, %p828_p0 }
 0x2c9   : > { %p824_p13 = pneg %p823_p12 }
 0x2cb   : > { %p831_p3 = pnand %p830_p2, %p824_p13 }
 0x331   : > { %v498_v56 = vpop.permute.xlu0 %497 }
 0x332   : > { %v504_v58 = vsel %vm387_vm7, %v493_v57, %v498_v56 }
 0x334   : > { %v502_v59 = vpop.permute.xlu1 %501 }
 0x335   : > { %v505_v60 = vsel %vm389_vm8, %v504_v58, %v502_v59 }
 0x336   : > { %v506_v61 = vpack.c.bf16 %v505_v60, %v505_v60 }
 0x338   : > { %760 = vmatmul.mubr.msk.bf16.vlgmr.msra.gmra.mrb[4].mxu0 %vm447_vm9, %v506_v61 }
 0x40b   : > { %v599_v63 = vpop.f32.mrb[4].mxu0 }
 0x40c   : > { %v600_v0 = vadd.f32 %v697_v62, %v599_v63  ;;  %v761_v1 = vpop.f32.mrb[5].mxu0 }
 0x40d   : > { %v602_v2 = vpop.f32.mrb[6].mxu0 }
 0x40e   : > { %v605_v3 = vmax.f32 %v600_v0, 0.0  ;;  %v762_v4 = vpop.f32.mrb[7].mxu0 }
 0x410   : > { %606 = vst.msk [vmem:[%s269_s15] sm:$0xff] %vm387_vm7, %v605_v3 }
 0x411   : > { %834 = shalt.err (!%p831_p3)
}
 0x412   : > { %s835_s22 = scalar_lea.hbm %s1087_s19, 128  ;;  %s839_s14 = scalar_lea.hbm %s1137_s7, 256 }
 0x413   : > { %p836_p4 = scmp.ne.s32.totalorder %s1087_s19, %s835_s22  ;;  %p840_p9 = scmp.lt.u32.totalorder %s1087_s19, %s1137_s7 }
 0x414   : > { %p841_p10 = scmp.lt.u32.totalorder %s839_s14, %s835_s22  ;;  %p843_p12 = scmp.lt.u32.totalorder %s835_s22, %s1087_s19 }
 0x415   : > { %p837_p7 = pnand %p836_p4, %p970_p5 }
 0x416   : > { %p842_p11 = por %p841_p10, %p840_p9 }
 0x417   : > { %p838_p8 = pneg %p837_p7 }
 0x418   : > { %p844_p13 = por %p843_p12, %p842_p11 }
 0x41a   : > { %p845_p0 = pnand %p844_p13, %p838_p8 }
 0x41c   : > { %848 = shalt.err (!%p845_p0)
}
 0x41d   : > { %763 = dma.vmem_to_hbm [thread:$0]  (%p970_p5), %s1089_s16, 128, %s1087_s19, %s608_s28  }
 0x41e PF: > { %p769_p1 = scmp.ge.s32.totalorder %s883_s27, 2  ;;  %s633_s17 = sand.u32 1, %s871_s24  }
 0x41f   : > { %s634_s18 = scalar_lea.sflag [#allocation3], %s633_s17 }
 0x420   : > { %p766_p2 = pnand %p769_p1, %p974_p6 }
 0x422   : > { %866 = dma.done.wait (!%p766_p2), %s634_s18, 128  }
 0x423   : > { %868 = vsyncadd (!%p766_p2), %s634_s18, 4294967168  ;;  %p17_p3 = scmp.ge.s32.totalorder %s957_s30, 4   ;;  %s1144_s24 = smov %s875_s25 }
 0x424   : > { %s1145_s25 = smov %s879_s26  ;;  %s1146_s26 = smov %s968_s10 }
 0x425   : > { %s1147_s27 = smov %s957_s30  ;;  %19 = sbr.rel (!%p17_p3) target bundleno = 3 (0x3), region = 83 }
 0x42c   :  { %639 = vsyncpa [#allocation3], 1 }
 0x42d   :  { %641 = vsyncpa [#allocation3 + $0x1], 1 }

</bundles_post_ra>
